<compile_context>
chip_gen: v7x
topology: tpu7x:2x2x1
jax: 0.10.0
libtpu: 0.0.40
codegen_flags: <defaults>
</compile_context>

<pallas_src>
import functools

import jax
import jax.numpy as jnp
from jax.experimental import pallas as pl
from jax.experimental.pallas import tpu as pltpu


def _round_up(a, b):
    return ((a + b - 1) // b) * b


def _col_bytes(rows, itemsize):
    """VMEM bytes per lane-column of a (rows, T) tile, incl. sublane padding."""
    pack = max(1, 4 // itemsize)                 # sub-32-bit dtypes pack sublanes
    return _round_up(rows, 8 * pack) * itemsize


def _vmem_capacity_bytes():
    try:
        return int(pltpu.get_tpu_info().vmem_capacity_bytes)
    except Exception:
        return 64 * 1024 * 1024                  # conservative: v7x per-TC VMEM


def _focal_loss_kernel(x_ref, t_ref, a_ref, out_ref, acc_ref, *,
                       gamma, hw_valid, t_tile, tiles_per_chunk,
                       has_alpha, needs_mask):
    """Focal loss over one (batch, spatial-chunk, spatial-tile) block.

    x_ref  : (C, T)    logits tile (classes on sublanes, spatial on lanes)
    t_ref  : (1, T)    int32 target class per spatial position
    a_ref  : (C, 1)    f32 per-class alpha (unused when has_alpha=False)
    out_ref: (1, 128)  f32 per-(batch, chunk) partial sum (lane-dense scalar)
    acc_ref: (1, T)    f32 running per-lane loss accumulator (scratch)
    """
    cidx = pl.program_id(1)
    j = pl.program_id(2)

    @pl.when(j == 0)
    def _():
        acc_ref[...] = jnp.zeros_like(acc_ref)

    x = x_ref[...].astype(jnp.float32)                        # (C, T)
    t = t_ref[...]                                            # (1, T) int32

    # Stable softmax pieces along the class (sublane) axis; exp(z) is reused
    # for both the log-sum-exp and pt (no second exp per position).
    m = jnp.max(x, axis=0, keepdims=True)                     # (1, T)
    z = x - m
    ez = jnp.exp(z)                                           # (C, T)
    sum_ez = jnp.sum(ez, axis=0, keepdims=True)               # (1, T)

    cls = jax.lax.broadcasted_iota(jnp.int32, x.shape, 0)     # (C, T)
    onehot = cls == t                                         # (C, T)

    z_t = jnp.sum(jnp.where(onehot, z, 0.0), axis=0, keepdims=True)   # (1, T)
    e_t = jnp.sum(jnp.where(onehot, ez, 0.0), axis=0, keepdims=True)  # (1, T)

    logpt = z_t - jnp.log(sum_ez)                             # (1, T)
    pt = e_t * pl.reciprocal(sum_ez, approx=True)             # (1, T)

    if has_alpha:
        at = jnp.sum(jnp.where(onehot, a_ref[...], 0.0), axis=0, keepdims=True)
        logpt = logpt * at                                    # alpha scales logpt only

    # (1 - pt) ** gamma, clamped so approx-rcp rounding (pt slightly > 1) can't
    # produce a negative base (NaN for fractional gamma).
    g = float(gamma)
    base = jnp.maximum(1.0 - pt, 0.0)
    if g == 0.0:
        w = jnp.ones_like(pt)
    elif g.is_integer() and 1 <= int(g) <= 4:
        w = base
        for _ in range(int(g) - 1):
            w = w * base
    else:
        w = base ** g

    loss = -w * logpt                                         # (1, T)

    if needs_mask:
        blk = cidx * tiles_per_chunk + j                      # global tile index
        is_full = (blk + 1) * t_tile <= hw_valid              # scalar predicate

        @pl.when(is_full)
        def _():
            acc_ref[...] += loss

        @pl.when(jnp.logical_not(is_full))
        def _():
            # Select (never multiply-by-mask): garbage/NaN in out-of-bounds
            # boundary-block columns must not reach the accumulator.
            pos = blk * t_tile + jax.lax.broadcasted_iota(jnp.int32, loss.shape, 1)
            acc_ref[...] += jnp.where(pos < hw_valid, loss, 0.0)
    else:
        acc_ref[...] += loss

    @pl.when(j == pl.num_programs(2) - 1)
    def _():
        s = jnp.sum(acc_ref[...])                             # one XLU reduce / chunk
        out_ref[...] = jnp.broadcast_to(s, out_ref.shape).astype(jnp.float32)


def focal_loss_pallas(inputs_nchw, target_nhw, *, gamma=0.0, alpha=None,
                      size_average=True, tile_hw=65536):
    """Focal loss matching the PyTorch FocalLoss.forward semantics.

    inputs_nchw: (N, C, H, W) float logits (f32 or bf16 — consumed as given)
    target_nhw : (N, H, W)    int class indices
    alpha      : None, float (binary -> [a, 1-a]), or list of per-class weights
    """
    n, c, h, w = inputs_nchw.shape
    hw = h * w
    m = n * hw

    # Native-layout view: (N, C, HW) — free reshape, no transpose, no HBM pass,
    # no dtype change (bf16 logits stay bf16 on the wire; upcast in-register).
    x3 = inputs_nchw.reshape(n, c, hw)
    t3 = target_nhw.reshape(n, 1, hw).astype(jnp.int32)

    # --- VMEM budget (sublane-padding aware, generation aware) ---------------
    in_isz = jnp.dtype(x3.dtype).itemsize
    bytes_per_pos = (2 * (_col_bytes(c, in_isz) + _col_bytes(1, 4))  # dbl-buffered in
                     + _col_bytes(1, 4))                             # acc scratch
    vmem_cap = _vmem_capacity_bytes()
    budget = min(40 * 1024 * 1024, vmem_cap * 3 // 5)
    max_t_budget = max(128, (budget // bytes_per_pos) // 128 * 128)

    # Pad only to the next 128 multiple (usually a no-op); any partial last
    # t_tile block is handled by the in-kernel select mask, never by padding.
    hw_pad = _round_up(hw, 128)
    if hw_pad != hw:
        x3 = jnp.pad(x3, ((0, 0), (0, 0), (0, hw_pad - hw)))
        t3 = jnp.pad(t3, ((0, 0), (0, 0), (0, hw_pad - hw)))

    t_tile = min(_round_up(max(tile_hw, 128), 128), max_t_budget, hw_pad)
    t_tile = max(128, (t_tile // 128) * 128)

    n_tiles = pl.cdiv(hw_pad, t_tile)
    # v7x megacore: give the grid a second parallel axis so 2 TCs stay busy
    # even with N=1 / odd N.  Pure loop restructuring on 1-TC chips.
    n_chunks = 2 if n_tiles >= 2 else 1
    tiles_per_chunk = pl.cdiv(n_tiles, n_chunks)
    needs_mask = (n_chunks * tiles_per_chunk * t_tile != hw)

    # Per-class alpha column (C, 1).
    has_alpha = alpha is not None
    if not has_alpha:
        alpha_vec = jnp.ones((c, 1), dtype=jnp.float32)
    else:
        if isinstance(alpha, (float, int)):
            a = jnp.array([float(alpha), 1.0 - float(alpha)], dtype=jnp.float32)
        else:
            a = jnp.asarray(alpha, dtype=jnp.float32).reshape(-1)
        if a.shape[0] < c:
            # PyTorch's alpha.gather(0, target) would index-error here.
            raise ValueError(f"alpha has {a.shape[0]} entries but inputs have "
                             f"{c} classes")
        alpha_vec = a[:c].reshape(c, 1)

    footprint = bytes_per_pos * t_tile + (1 << 20)   # + alpha/out/internal slack
    vmem_limit = int(min(vmem_cap * 9 // 10, max(footprint + (8 << 20), 32 << 20)))

    grid = (n, n_chunks, int(tiles_per_chunk))

    def in_idx(i, cidx, j):
        blk = jnp.minimum(cidx * tiles_per_chunk + j, n_tiles - 1)
        return (i, 0, blk)

    kernel = functools.partial(
        _focal_loss_kernel, gamma=float(gamma), hw_valid=hw, t_tile=int(t_tile),
        tiles_per_chunk=int(tiles_per_chunk), has_alpha=has_alpha,
        needs_mask=bool(needs_mask))

    partials = pl.pallas_call(
        kernel,
        out_shape=jax.ShapeDtypeStruct((n, n_chunks, 1, 128), jnp.float32),
        grid_spec=pltpu.PrefetchScalarGridSpec(
            num_scalar_prefetch=0,
            grid=grid,
            in_specs=[
                # logits: classes on sublanes, spatial tile on lanes
                pl.BlockSpec((None, c, t_tile), in_idx),
                # targets: lane-dense int32 row
                pl.BlockSpec((None, 1, t_tile), in_idx),
                # alpha column, resident across the whole grid
                pl.BlockSpec((c, 1), lambda i, cidx, j: (0, 0)),
            ],
            # per-(batch, chunk) lane-dense partial sum, written once per chunk
            out_specs=pl.BlockSpec((None, None, 1, 128),
                                   lambda i, cidx, j: (i, cidx, 0, 0)),
            scratch_shapes=[pltpu.VMEM((1, t_tile), jnp.float32)],
        ),
        compiler_params=pltpu.CompilerParams(
            dimension_semantics=("parallel", "parallel", "arbitrary"),
            vmem_limit_bytes=vmem_limit),
    )(x3, t3, alpha_vec)

    total = jnp.sum(partials[:, :, 0, 0])
    if size_average:
        return total / jnp.float32(m)
    return total


def focal_loss_reference(inputs_nchw, target_nhw, *, gamma=0.0, alpha=None,
                         size_average=True):
    """Pure-JAX reference mirroring the PyTorch code."""
    n, c, h, w = inputs_nchw.shape
    x = jnp.transpose(inputs_nchw, (0, 2, 3, 1)).reshape(-1, c).astype(jnp.float32)
    t = target_nhw.reshape(-1).astype(jnp.int32)
    logp = jax.nn.log_softmax(x, axis=1)
    logpt = jnp.take_along_axis(logp, t[:, None], axis=1)[:, 0]
    pt = jnp.exp(logpt)
    if alpha is not None:
        if isinstance(alpha, (float, int)):
            a = jnp.array([float(alpha), 1.0 - float(alpha)], dtype=jnp.float32)
        else:
            a = jnp.asarray(alpha, dtype=jnp.float32)
        logpt = logpt * a[t]
    loss = -((1.0 - pt) ** gamma) * logpt
    return loss.mean() if size_average else loss.sum()


if __name__ == "__main__":
    key = jax.random.PRNGKey(0)
    k1, k2, k3, k4 = jax.random.split(key, 4)

    # Tolerances are 1e-3 because the kernel uses the EUP approximate
    # reciprocal (pl.reciprocal(..., approx=True)) for pt.

    # 1) alpha list + mean, single tile per batch.
    N, C, H, W = 2, 4, 16, 16
    logits = jax.random.normal(k1, (N, C, H, W), dtype=jnp.float32)
    targets = jax.random.randint(k2, (N, H, W), 0, C, dtype=jnp.int32)
    out = jax.block_until_ready(
        focal_loss_pallas(logits, targets, gamma=2.0, alpha=[0.1, 0.2, 0.3, 0.4],
                          size_average=True))
    ref = focal_loss_reference(logits, targets, gamma=2.0,
                               alpha=[0.1, 0.2, 0.3, 0.4], size_average=True)
    assert jnp.allclose(out, ref, rtol=1e-3, atol=1e-3), (out, ref)

    # 2) alpha=None + sum, forced small tile -> exercises the 2-chunk grid
    #    (v7x-style split) with exact coverage (no masking).
    out2 = jax.block_until_ready(
        focal_loss_pallas(logits, targets, gamma=2.0, alpha=None,
                          size_average=False, tile_hw=128))
    ref2 = focal_loss_reference(logits, targets, gamma=2.0, alpha=None,
                                size_average=False)
    assert jnp.allclose(out2, ref2, rtol=1e-3, atol=1e-3), (out2, ref2)

    # 3) N=1, C=3, H*W=160 (non-128-aligned tail -> boundary-block masking),
    #    non-integer gamma (pow path), per-class alpha of length C.
    logits3 = jax.random.normal(k3, (1, 3, 16, 10), dtype=jnp.float32)
    targets3 = jax.random.randint(k4, (1, 16, 10), 0, 3, dtype=jnp.int32)
    out3 = jax.block_until_ready(
        focal_loss_pallas(logits3, targets3, gamma=2.5, alpha=[0.2, 0.3, 0.5],
                          size_average=True))
    ref3 = focal_loss_reference(logits3, targets3, gamma=2.5,
                                alpha=[0.2, 0.3, 0.5], size_average=True)
    assert jnp.allclose(out3, ref3, rtol=1e-3, atol=1e-3), (out3, ref3)

    print("KERNEL_OK")
</pallas_src>

<mosaic_0001>
module attributes {stable_mosaic.version = 11 : i64} {
  func.func @_focal_loss_kernel(%arg0: i32, %arg1: i32, %arg2: i32, %arg3: memref<1x4x256xf32, #tpu.memory_space<vmem>>, %arg4: memref<1x1x256xi32, #tpu.memory_space<vmem>>, %arg5: memref<4x1xf32, #tpu.memory_space<vmem>>, %arg6: memref<1x1x1x128xf32, #tpu.memory_space<vmem>>, %arg7: memref<1x256xf32, #tpu.memory_space<vmem>>) attributes {dimension_semantics = [#tpu.dimension_semantics<parallel>, #tpu.dimension_semantics<parallel>, #tpu.dimension_semantics<arbitrary>], iteration_bounds = array<i64: 2, 1, 1>, scalar_prefetch = 0 : i64, scratch_operands = 1 : i64, tpu.core_type = #tpu.core_type<tc>, window_params = [{transform_indices = @transform_0, window_bounds = array<i64: 1, 4, 256>}, {transform_indices = @transform_1, window_bounds = array<i64: 1, 1, 256>}, {pipeline_mode = #tpu.pipeline_mode<synchronous>, transform_indices = @transform_2, window_bounds = array<i64: 4, 1>}, {transform_indices = @transform_3, window_bounds = array<i64: 1, 1, 1, 128>}]} {
    %c0_i32 = arith.constant 0 : i32
    %0 = arith.cmpi eq, %arg2, %c0_i32 : i32
    %1 = arith.extui %0 : i1 to i32
    %c0_i32_0 = arith.constant 0 : i32
    %2 = arith.cmpi ne, %1, %c0_i32_0 : i32
    scf.if %2 {
      %cst_24 = arith.constant 0.000000e+00 : f32
      %51 = vector.broadcast %cst_24 : f32 to vector<1x256xf32>
      %c0_25 = arith.constant 0 : index
      %c0_26 = arith.constant 0 : index
      %52 = vector.load %arg7[%c0_25, %c0_26] : memref<1x256xf32, #tpu.memory_space<vmem>>, vector<1x256xf32>
      tpu.vector_store %arg7[%c0_25, %c0_26], %51 {strides = array<i32>} : memref<1x256xf32, #tpu.memory_space<vmem>>, vector<1x256xf32>,
    } else {
    }
    %c0 = arith.constant 0 : index
    %c0_1 = arith.constant 0 : index
    %c0_2 = arith.constant 0 : index
    %3 = vector.load %arg3[%c0, %c0_1, %c0_2] : memref<1x4x256xf32, #tpu.memory_space<vmem>>, vector<1x4x256xf32>
    %4 = vector.shape_cast %3 : vector<1x4x256xf32> to vector<4x256xf32>
    %c0_3 = arith.constant 0 : index
    %c0_4 = arith.constant 0 : index
    %c0_5 = arith.constant 0 : index
    %5 = vector.load %arg4[%c0_3, %c0_4, %c0_5] : memref<1x1x256xi32, #tpu.memory_space<vmem>>, vector<1x1x256xi32>
    %6 = vector.shape_cast %5 : vector<1x1x256xi32> to vector<1x256xi32>
    %cst = arith.constant dense<0xFF800000> : vector<256xf32>
    %7 = vector.multi_reduction <maximumf>, %4, %cst [0] : vector<4x256xf32> to vector<256xf32>
    %8 = vector.shape_cast %7 : vector<256xf32> to vector<1x256xf32>
    %9 = vector.broadcast %8 : vector<1x256xf32> to vector<4x256xf32>
    %10 = arith.subf %4, %9 : vector<4x256xf32>
    %11 = math.exp %10 : vector<4x256xf32>
    %cst_6 = arith.constant dense<0.000000e+00> : vector<256xf32>
    %12 = vector.multi_reduction <add>, %11, %cst_6 [0] : vector<4x256xf32> to vector<256xf32>
    %13 = vector.shape_cast %12 : vector<256xf32> to vector<1x256xf32>
    %14 = tpu.iota {dimensions = array<i32: 0>} : vector<4x256xi32>
    %15 = vector.broadcast %6 : vector<1x256xi32> to vector<4x256xi32>
    %16 = arith.cmpi eq, %14, %15 : vector<4x256xi32>
    %cst_7 = arith.constant 0.000000e+00 : f32
    %17 = vector.broadcast %cst_7 : f32 to vector<4x256xf32>
    %18 = arith.select %16, %10, %17 : vector<4x256xi1>, vector<4x256xf32>
    %cst_8 = arith.constant dense<0.000000e+00> : vector<256xf32>
    %19 = vector.multi_reduction <add>, %18, %cst_8 [0] : vector<4x256xf32> to vector<256xf32>
    %20 = vector.shape_cast %19 : vector<256xf32> to vector<1x256xf32>
    %cst_9 = arith.constant 0.000000e+00 : f32
    %21 = vector.broadcast %cst_9 : f32 to vector<4x256xf32>
    %22 = arith.select %16, %11, %21 : vector<4x256xi1>, vector<4x256xf32>
    %cst_10 = arith.constant dense<0.000000e+00> : vector<256xf32>
    %23 = vector.multi_reduction <add>, %22, %cst_10 [0] : vector<4x256xf32> to vector<256xf32>
    %24 = vector.shape_cast %23 : vector<256xf32> to vector<1x256xf32>
    %25 = math.log %13 : vector<1x256xf32>
    %26 = arith.subf %20, %25 : vector<1x256xf32>
    %27 = tpu.reciprocal %13 {approx = true} : vector<1x256xf32> -> vector<1x256xf32>
    %28 = arith.mulf %24, %27 : vector<1x256xf32>
    %c0_11 = arith.constant 0 : index
    %c0_12 = arith.constant 0 : index
    %29 = vector.load %arg5[%c0_11, %c0_12] : memref<4x1xf32, #tpu.memory_space<vmem>>, vector<4x1xf32>
    %cst_13 = arith.constant 0.000000e+00 : f32
    %30 = vector.shape_cast %29 : vector<4x1xf32> to vector<4x1xf32>
    %31 = vector.broadcast %30 : vector<4x1xf32> to vector<4x256xf32>
    %32 = vector.broadcast %cst_13 : f32 to vector<4x256xf32>
    %33 = arith.select %16, %31, %32 : vector<4x256xi1>, vector<4x256xf32>
    %cst_14 = arith.constant dense<0.000000e+00> : vector<256xf32>
    %34 = vector.multi_reduction <add>, %33, %cst_14 [0] : vector<4x256xf32> to vector<256xf32>
    %35 = vector.shape_cast %34 : vector<256xf32> to vector<1x256xf32>
    %36 = arith.mulf %26, %35 : vector<1x256xf32>
    %cst_15 = arith.constant 1.000000e+00 : f32
    %37 = vector.broadcast %cst_15 : f32 to vector<1x256xf32>
    %38 = arith.subf %37, %28 : vector<1x256xf32>
    %cst_16 = arith.constant 0.000000e+00 : f32
    %39 = vector.broadcast %cst_16 : f32 to vector<1x256xf32>
    %40 = arith.maximumf %38, %39 : vector<1x256xf32>
    %41 = arith.mulf %40, %40 : vector<1x256xf32>
    %cst_17 = arith.constant 0.000000e+00 : f32
    %42 = vector.broadcast %cst_17 : f32 to vector<1x256xf32>
    %43 = arith.subf %42, %41 : vector<1x256xf32>
    %44 = arith.mulf %43, %36 : vector<1x256xf32>
    %c0_18 = arith.constant 0 : index
    %c0_19 = arith.constant 0 : index
    %45 = vector.load %arg7[%c0_18, %c0_19] : memref<1x256xf32, #tpu.memory_space<vmem>>, vector<1x256xf32>
    %46 = arith.addf %45, %44 : vector<1x256xf32>
    %c0_20 = arith.constant 0 : index
    %c0_21 = arith.constant 0 : index
    %47 = vector.load %arg7[%c0_20, %c0_21] : memref<1x256xf32, #tpu.memory_space<vmem>>, vector<1x256xf32>
    tpu.vector_store %arg7[%c0_20, %c0_21], %46 {strides = array<i32>} : memref<1x256xf32, #tpu.memory_space<vmem>>, vector<1x256xf32>,
    %c0_i32_22 = arith.constant 0 : i32
    %48 = arith.cmpi eq, %arg2, %c0_i32_22 : i32
    %49 = arith.extui %48 : i1 to i32
    %c0_i32_23 = arith.constant 0 : i32
    %50 = arith.cmpi ne, %49, %c0_i32_23 : i32
    scf.if %50 {
      %c0_24 = arith.constant 0 : index
      %c0_25 = arith.constant 0 : index
      %51 = vector.load %arg7[%c0_24, %c0_25] : memref<1x256xf32, #tpu.memory_space<vmem>>, vector<1x256xf32>
      %52 = vector.shape_cast %51 : vector<1x256xf32> to vector<1x1x256xf32>
      %cst_26 = arith.constant dense<0.000000e+00> : vector<1xf32>
      %53 = vector.multi_reduction <add>, %52, %cst_26 [1, 2] : vector<1x1x256xf32> to vector<1xf32>
      %54 = vector.shape_cast %53 : vector<1xf32> to vector<1x1x1xf32>
      %55 = vector.extract %54[0, 0, 0] : f32 from vector<1x1x1xf32>
      %56 = vector.broadcast %55 : f32 to vector<1x128xf32>
      %c0_27 = arith.constant 0 : index
      %c0_28 = arith.constant 0 : index
      %c0_29 = arith.constant 0 : index
      %c0_30 = arith.constant 0 : index
      %57 = vector.load %arg6[%c0_27, %c0_28, %c0_29, %c0_30] : memref<1x1x1x128xf32, #tpu.memory_space<vmem>>, vector<1x1x1x128xf32>
      %58 = vector.shape_cast %57 : vector<1x1x1x128xf32> to vector<1x128xf32>
      %59 = vector.shape_cast %56 : vector<1x128xf32> to vector<1x1x1x128xf32>
      tpu.vector_store %arg6[%c0_27, %c0_28, %c0_29, %c0_30], %59 {strides = array<i32>} : memref<1x1x1x128xf32, #tpu.memory_space<vmem>>, vector<1x1x1x128xf32>,
    } else {
    }
    return
  }
  func.func @transform_0(%arg0: i32, %arg1: i32, %arg2: i32) -> (i32, i32, i32) {
    %c1_i32 = arith.constant 1 : i32
    %0 = arith.muli %arg1, %c1_i32 : i32
    %1 = arith.addi %0, %arg2 : i32
    %c0_i32 = arith.constant 0 : i32
    %2 = arith.minsi %1, %c0_i32 : i32
    %c0_i32_0 = arith.constant 0 : i32
    %c0_i32_1 = arith.constant 0 : i32
    return %arg0, %c0_i32_0, %2 : i32, i32, i32
  }
  func.func @transform_1(%arg0: i32, %arg1: i32, %arg2: i32) -> (i32, i32, i32) {
    %c1_i32 = arith.constant 1 : i32
    %0 = arith.muli %arg1, %c1_i32 : i32
    %1 = arith.addi %0, %arg2 : i32
    %c0_i32 = arith.constant 0 : i32
    %2 = arith.minsi %1, %c0_i32 : i32
    %c0_i32_0 = arith.constant 0 : i32
    %c0_i32_1 = arith.constant 0 : i32
    return %arg0, %c0_i32_0, %2 : i32, i32, i32
  }
  func.func @transform_2(%arg0: i32, %arg1: i32, %arg2: i32) -> (i32, i32) {
    %c0_i32 = arith.constant 0 : i32
    %c0_i32_0 = arith.constant 0 : i32
    %c0_i32_1 = arith.constant 0 : i32
    return %c0_i32, %c0_i32_0 : i32, i32
  }
  func.func @transform_3(%arg0: i32, %arg1: i32, %arg2: i32) -> (i32, i32, i32, i32) {
    %c0_i32 = arith.constant 0 : i32
    %c0_i32_0 = arith.constant 0 : i32
    %c0_i32_1 = arith.constant 0 : i32
    return %arg0, %arg1, %c0_i32, %c0_i32_0 : i32, i32, i32, i32
  }
}

</mosaic_0001>

<bundles_post_ra>
// kernel: tpu_custom_call.1
= control target key start
LH: loop header
LB: loop body
LE: loop exit
PB: predicated region body
PF: predicated region fallthrough
CT: control target
= control target key end

     0   :  { %8 = vsyncpa [#allocation4], 0  ;;  %s1045_s0 = inlined_call_operand.hbm [shape: f32[2,4,256], index: 0, kind: input, shape index: {}]   ;;  %s1046_s1 = inlined_call_operand.vmem [shape: s32[2,1,256], index: 1, kind: input, shape index: {}]   ;;  %s1047_s2 = inlined_call_operand.vmem [shape: f32[4,1], index: 2, kind: input, shape index: {}]   ;;  %s1048_s3 = inlined_call_operand.hbm [shape: f32[2,1,1,128], index: 3, kind: output, shape index: {}]  }
   0x1   :  { %10 = vsyncpa [#allocation4 + $0x1], 0 }
   0x2   :  { %11 = vsyncpa [#allocation5], 0 }
   0x3   :  { %13 = vsyncpa [#allocation5 + $0x1], 0  ;;  %s819_s12 = smov 0   ;;  %s821_s13 = smov 0  }
   0x4   :  { %s823_s14 = smov 0   ;;  %s825_s15 = smov 0  }
   0x5   :  { %s827_s16 = smov 0   ;;  %s829_s17 = smov 0  }
   0x6 LB: > { %s587_s18 = sadd.s32 4294967295, %s792_s17   ;;  %s588_s19 = sadd.s32 4294967294, %s792_s17   ;;  %s792_s17 = sphi %s829_s17, %s19_s17   ;;  %s788_s16 = sphi %s827_s16, %s1066_s16   ;;  %s784_s15 = sphi %s825_s15, %s1065_s15   ;;  %s780_s14 = sphi %s823_s14, %s1064_s14   ;;  %s776_s13 = sphi %s821_s13, %s1063_s13   ;;  %s772_s12 = sphi %s819_s12, %s1062_s12  }
   0x7   : > { %s38_s20 = sadd.s32 1, %s788_s16  ;;  %s53_s21 = sadd.s32 1, %s780_s14 }
   0x8   : > { %p40_p0 = scmp.ge.s32.totalorder %s38_s20, 2  ;;  %p60_p1 = scmp.ne.s32.totalorder %s780_s14, %s776_s13 }
   0x9   : > { %p61_p2 = scmp.eq.s32.totalorder %s792_s17, 0  ;;  %p66_p3 = scmp.ne.s32.totalorder %s776_s13, %s772_s12 }
   0xa   : > { %s1068_s20 = smov (%p40_p0, %s38_s20), 0  ;;  %p67_p5 = scmp.eq.s32.totalorder %s587_s18, 0 }
   0xb   : > { %p860_p4 = por %p61_p2, %p60_p1  ;;  %s48_s23 = ssub.s32 %s788_s16, %s1068_s20 }
   0xc   : > { %p147_p6 = scmp.eq.s32.totalorder %s587_s18, 1  ;;  %p51_p7 = scmp.eq.s32.totalorder %s48_s23, 0 }
   0xd   : > { %p866_p8 = por %p67_p5, %p66_p3  ;;  %p153_p10 = scmp.eq.s32.totalorder %s588_s19, 1 }
   0xe   : > { %p870_p9 = por %p147_p6, %p60_p1  ;;  %p615_p13 = scmp.lt.s32.totalorder %s792_s17, 2 }
   0xf   : > { %s875_s26 = scalar_select %p51_p7, %s780_s14, %s53_s21  }
  0x10   : > { %s1052_s25 = scalar_select %p870_p9, 1, 0 }
  0x11   : > { %p877_p11 = por %p153_p10, %p66_p3  ;;  %s176_s28 = sand.u32 1, %s780_s14  }
  0x12   : > { %s591_s29 = sshll.u32 %s176_s28, 3  ;;  %s600_s30 = sshll.u32 %s788_s16, 7 }
  0x13   : > { %s1053_s27 = scalar_select %p877_p11, 1, 0 }
  0x14   : > { %s888_s6 = scalar_lea.hbm %s1045_s0, %s600_s30  ;;  %s180_s7 = scalar_lea.vmem [#allocation3], %s591_s29 }
  0x15   : > { %s193_s8 = sshll.u32 %s180_s7, 4  ;;  %p894_p0 = pnand %p615_p13, %p860_p4  ;;  %s890_s8 = int_to_ptr.vmem [resolvable:$true] %s193_s8 }
  0x16   : > { %s177_s10 = scalar_lea.sflag [#allocation4], %s176_s28  ;;  %s680_s11 = scalar_lea.hbm %s888_s6, 128 }
  0x17   : > { %p681_p3 = scmp.ne.s32.totalorder %s888_s6, %s680_s11  ;;  %p682_p5 = pneg %p894_p0 }
  0x18   : > { %s685_s21 = scalar_lea.hbm %s1045_s0, 256  ;;  %p686_p4 = scmp.lt.u32.totalorder %s888_s6, %s1045_s0 }
  0x19   : > { %p683_p6 = pnand %p682_p5, %p681_p3  ;;  %p687_p10 = scmp.lt.u32.totalorder %s685_s21, %s680_s11 }
  0x1a   : > { %p689_p12 = scmp.lt.u32.totalorder %s680_s11, %s888_s6 }
  0x1b   : > { %p684_p7 = pneg %p683_p6  ;;  %p688_p13 = por %p687_p10, %p686_p4 }
  0x1d   : > { %p690_p1 = por %p689_p12, %p688_p13 }
  0x1f   : > { %p691_p2 = pnand %p690_p1, %p684_p7 }
  0x21   : > { %694 = shalt.err (!%p691_p2)
}
  0x22   : > { %s695_s28 = scalar_lea.vmem %s890_s8, 128  ;;  %s794_s29 = smov [#allocation3]  }
  0x23   : > { %p696_p3 = scmp.ne.s32.totalorder %s890_s8, %s695_s28  ;;  %s700_s30 = sshll.u32 %s794_s29, 4  ;;  %s701_s30 = int_to_ptr.vmem [resolvable:$false] %s700_s30 }
  0x24   : > { %s702_s4 = scalar_lea.vmem %s701_s30, 256  ;;  %p703_p9 = scmp.lt.s32.totalorder %s890_s8, %s701_s30 }
  0x25   : > { %p698_p6 = pnand %p696_p3, %p682_p5  ;;  %p704_p4 = scmp.lt.s32.totalorder %s702_s4, %s695_s28 }
  0x27   : > { %p699_p11 = pneg %p698_p6  ;;  %p705_p10 = por %p704_p4, %p703_p9 }
  0x29   : > { %p706_p12 = pnand %p705_p10, %p699_p11 }
  0x2b   : > { %709 = shalt.err (!%p706_p12)
}
  0x2c   : > { %610 = dma.hbm_to_vmem [thread:$0]  (!%p894_p0), %s888_s6, 128, %s890_s8, %s177_s10  }
  0x2d   : > { %p1055_p1 = scmp.lt.s32.totalorder %s792_s17, 3  ;;  %p1056_p2 = scmp.ge.s32.totalorder %s792_s17, 1 }
  0x2f   : > { %p217_p5 = pnand %p1056_p2, %p1055_p1 }
  0x30   : > { %s930_s5 = sand.u32 (!%p217_p5), 1, %s776_s13  }
  0x31   : > { %220 = sbr.rel (%p217_p5) target bundleno = 445 (0x1bd), region = 32  ;;  %s595_s7 = sshll.u32 (!%p217_p5), %s930_s5, 3 }
  0x32   : > { %s223_s11 = scalar_lea.sflag (!%p217_p5), [#allocation4], %s930_s5  ;;  %s226_s18 = scalar_lea.vmem (!%p217_p5), [#allocation3], %s595_s7 }
  0x38   : > { %763 = dma.done.wait (%p866_p8), %s223_s11, 128  }
  0x39   : > { %765 = vsyncadd (%p866_p8), %s223_s11, 4294967168  ;;  %v282_v0 = vlaneseq  ;;  %v795_v1 = vmov 0   ;;  %v796_v3 = vmov 0.0   ;;  %v388_v4 = vld [vmem:[%s1047_s2] sm:$0xf]  ;;  %vm292_vm1 = vcmask 1043456  }
  0x3a   : > { %668 = vset.pattern.permute.xlu0 %v795_v1  ;;  %v287_v5 = vld [vmem:[%s226_s18] sm:$0xff]  ;;  %p267_p8 = scmp.lt.s32.totalorder %s784_s15, 1  ;;  %vm462_vm4 = vcmask 1040384   ;;  %s258_s22 = scalar_lea.vmem [#allocation6], %s930_s5 }
  0x3b   : > { %vm938_vm0 = vcmp.lt.s32.totalorder %v282_v0, 256  ;;  %391 = vperm.xlu0 %668, %v388_v4   ;;  %v290_v6 = vcombine.high %v287_v5, %v287_v5  ;;  %v293_v7 = vsel %vm292_vm1, %v287_v5, -inf  ;;  %v951_v25 = vshrl.u32 %v282_v0, 7  ;;  %s491_s23 = sshll.u32 %s258_s22, 4  ;;  %s597_s28 = sshll.u32 %s784_s15, 4  ;;  %s993_s23 = int_to_ptr.vmem [resolvable:$true] %s491_s23 }
  0x3c   : > { %286 = vst.msk [vmem:[#allocation2] sm:$0x3] %vm938_vm0, %v796_v3  ;;  %v294_v9 = vrot.slane %v293_v7, 4  ;;  %s268_s24 = scalar_select %p267_p8, %s784_s15, 1 }
  0x3d   : > { %v300_v8 = vsel %vm292_vm1, %v290_v6, -inf  ;;  %v335_v27 = vsub.s32 0, %v951_v25  ;;  %v339_v28 = vsub.s32 1, %v951_v25  ;;  %s998_s7 = scalar_lea.hbm %s1048_s3, %s597_s28  ;;  %s478_s11 = scalar_lea.sflag [#allocation5], %s930_s5 }
  0x3e   : > { %v301_v10 = vrot.slane %v300_v8, 4  ;;  %v295_v11 = vmax.f32 %v293_v7, %v294_v9  ;;  %s596_s9 = sshll.u32 %s268_s24, 1  ;;  %s710_s18 = scalar_lea.vmem %s993_s23, 16 }
  0x3f   : > { %s273_s21 = scalar_lea.vmem %s1046_s1, %s596_s9  ;;  %p711_p9 = scmp.ne.s32.totalorder %s993_s23, %s710_s18 }
  0x40   : > { %v302_v12 = vmax.f32 %v300_v8, %v301_v10  ;;  %v296_v13 = vrot.slane %v295_v11, 2  ;;  %v288_v30 = vld [vmem:[%s273_s21] sm:$0x3]  ;;  %p1059_p11 = scmp.ne.s32.totalorder %s1052_s25, 0  ;;  %s798_s15 = smov [#allocation6]  }
  0x41   : > { %v336_v34 = vrot.slane %v288_v30, %v335_v27  ;;  %v340_v35 = vrot.slane %v288_v30, %v339_v28  ;;  %s714_s6 = sshll.u32 %s798_s15, 4  ;;  %s715_s6 = int_to_ptr.vmem [resolvable:$false] %s714_s6 }
  0x42   : > { %v303_v14 = vrot.slane %v302_v12, 2  ;;  %v297_v15 = vmax.f32 %v295_v11, %v296_v13  ;;  %p712_p0 = pnand %p711_p9, %p1059_p11  ;;  %s716_s8 = scalar_lea.vmem %s715_s6, 32 }
  0x43   : > { %vm341_vm2 = vcmp.eq.s32.totalorder %v951_v25, %v336_v34  ;;  %vm342_vm3 = vcmp.eq.s32.totalorder %v951_v25, %v340_v35  ;;  %p717_p13 = scmp.lt.s32.totalorder %s993_s23, %s715_s6  ;;  %p718_p3 = scmp.lt.s32.totalorder %s716_s8, %s710_s18 }
  0x44   : > { %v304_v16 = vmax.f32 %v302_v12, %v303_v14  ;;  %v298_v17 = vrot.slane %v297_v15, 1  ;;  %p713_p7 = pneg %p712_p0 }
  0x45   : > { %p719_p6 = por %p718_p3, %p717_p13 }
  0x46   : > { %v305_v18 = vrot.slane %v304_v16, 1  ;;  %v299_v19 = vmax.f32 %v297_v15, %v298_v17 }
  0x47   : > { %p720_p4 = pnand %p719_p6, %p713_p7 }
  0x48   : > { %v306_v20 = vmax.f32 %v304_v16, %v305_v18 }
  0x4a   : > { %v309_v21 = vcombine.low %v299_v19, %v306_v20 }
  0x4c   : > { %v311_v22 = vsub.f32 %v287_v5, %v309_v21 }
  0x4e   : > { %v312_v23 = vmul.f32 1.442695, %v311_v22  ;;  %v344_v50 = vcombine.high %v311_v22, %v311_v22  ;;  %v346_v55 = vsel %vm341_vm2, %v311_v22, 0.0 }
  0x4f   : > { %v348_v59 = vsel %vm292_vm1, %v346_v55, 0.0 }
  0x50   : > { %670 = vpow2.f32 %v312_v23  ;;  %v347_v56 = vsel %vm342_vm3, %v344_v50, 0.0  ;;  %v349_v63 = vrot.slane %v348_v59, 4 }
  0x51   : > { %v355_v60 = vsel %vm292_vm1, %v347_v56, 0.0 }
  0x52   : > { %v356_v0 = vrot.slane %v355_v60, 4  ;;  %v350_v4 = vadd.f32 %v349_v63, %v348_v59 }
  0x54   : > { %v357_v5 = vadd.f32 %v356_v0, %v355_v60  ;;  %v351_v10 = vrot.slane %v350_v4, 2  ;;  %v422_v0 = vld [vmem:[#allocation2] sm:$0x3] }
  0x56   : > { %v358_v11 = vrot.slane %v357_v5, 2  ;;  %v352_v14 = vadd.f32 %v351_v10, %v350_v4 }
  0x58   : > { %v359_v15 = vadd.f32 %v358_v11, %v357_v5  ;;  %v353_v21 = vrot.slane %v352_v14, 1 }
  0x5a   : > { %v671_v24 = vpop.eup %670  ;;  %v360_v22 = vrot.slane %v359_v15, 1 }
  0x5b   : > { %v315_v26 = vcombine.high %v671_v24, %v671_v24  ;;  %v317_v29 = vsel %vm292_vm1, %v671_v24, 0.0  ;;  %v362_v39 = vsel %vm341_vm2, %v671_v24, 0.0 }
  0x5c   : > { %v318_v32 = vrot.slane %v317_v29, 4  ;;  %v364_v42 = vsel %vm292_vm1, %v362_v39, 0.0 }
  0x5d   : > { %v324_v31 = vsel %vm292_vm1, %v315_v26, 0.0  ;;  %v363_v40 = vsel %vm342_vm3, %v315_v26, 0.0  ;;  %v365_v46 = vrot.slane %v364_v42, 4 }
  0x5e   : > { %v325_v33 = vrot.slane %v324_v31, 4  ;;  %v319_v36 = vadd.f32 %v318_v32, %v317_v29  ;;  %v371_v43 = vsel %vm292_vm1, %v363_v40, 0.0 }
  0x5f   : > { %v372_v47 = vrot.slane %v371_v43, 4  ;;  %v366_v51 = vadd.f32 %v365_v46, %v364_v42  ;;  %v797_v42 = vmov 1966171168  }
  0x60   : > { %v326_v37 = vadd.f32 %v325_v33, %v324_v31  ;;  %v320_v38 = vrot.slane %v319_v36, 2 }
  0x61   : > { %v373_v52 = vadd.f32 %v372_v47, %v371_v43  ;;  %v367_v57 = vrot.slane %v366_v51, 2  ;;  %v427_v43 = vunpack.c.l.s4 %v797_v42 }
  0x62   : > { %v327_v41 = vrot.slane %v326_v37, 2  ;;  %v321_v44 = vadd.f32 %v320_v38, %v319_v36  ;;  %v361_v38 = vadd.f32 %v360_v22, %v359_v15 }
  0x63   : > { %v374_v58 = vrot.slane %v373_v52, 2  ;;  %v368_v61 = vadd.f32 %v367_v57, %v366_v51 }
  0x64   : > { %v328_v45 = vadd.f32 %v327_v41, %v326_v37  ;;  %v322_v48 = vrot.slane %v321_v44, 1  ;;  %v354_v37 = vadd.f32 %v353_v21, %v352_v14 }
  0x65   : > { %v375_v62 = vadd.f32 %v374_v58, %v373_v52  ;;  %v369_v1 = vrot.slane %v368_v61, 1  ;;  %v428_v52 = vunpack.c.0.s8 %v427_v43 }
  0x66   : > { %v329_v49 = vrot.slane %v328_v45, 1  ;;  %v323_v53 = vadd.f32 %v322_v48, %v321_v44 }
  0x67   : > { %v376_v3 = vrot.slane %v375_v62, 1  ;;  %v370_v7 = vadd.f32 %v369_v1, %v368_v61  ;;  %v431_v59 = vsub.s32 %v428_v52, %v951_v25 }
  0x68   : > { %v330_v54 = vadd.f32 %v329_v49, %v328_v45  ;;  %672 = vrcp.f32 %v323_v53 }
  0x69   : > { %v377_v8 = vadd.f32 %v376_v3, %v375_v62 }
  0x6a   : > { %674 = vrcp.f32 %v330_v54 }
  0x6b   : > { %676 = vlog2.f32 %v323_v53 }
  0x6c   : > { %678 = vlog2.f32 %v330_v54 }
  0x72   : > { %v673_v6 = vpop.eup %672 }
  0x73   : > { %v386_v12 = vmul.f32 %v673_v6, %v370_v7 }
  0x74   : > { %v675_v9 = vpop.eup %674 }
  0x75   : > { %v387_v13 = vmul.f32 %v675_v9, %v377_v8  ;;  %v412_v19 = vsub.f32 1.0, %v386_v12  ;;  %v677_v26 = vpop.eup %676 }
  0x76   : > { %v679_v31 = vpop.eup %678  ;;  %v379_v35 = vmul.f32 0.6931472, %v677_v26 }
  0x77   : > { %v413_v20 = vsub.f32 1.0, %v387_v13  ;;  %v414_v36 = vmax.f32 %v412_v19, 0.0  ;;  %v381_v39 = vmul.f32 0.6931472, %v679_v31 }
  0x78   : > { %v382_v48 = vsub.f32 %v354_v37, %v379_v35 }
  0x79   : > { %v415_v34 = vmax.f32 %v413_v20, 0.0  ;;  %v416_v46 = vmul.f32 %v414_v36, %v414_v36  ;;  %v383_v49 = vsub.f32 %v361_v38, %v381_v39 }
  0x7b   : > { %v417_v47 = vmul.f32 %v415_v34, %v415_v34  ;;  %v418_v55 = vsub.f32 0.0, %v416_v46 }
  0x7d   : > { %v419_v56 = vsub.f32 0.0, %v417_v47 }
  0xba   : > { %v392_v16 = vpop.permute.xlu0 %391 }
  0xbb   : > { %v394_v17 = vsel %vm341_vm2, %v392_v16, 0.0  ;;  %v395_v18 = vsel %vm342_vm3, %v392_v16, 0.0 }
  0xbc   : > { %v396_v23 = vsel %vm292_vm1, %v394_v17, 0.0  ;;  %v403_v24 = vsel %vm292_vm1, %v395_v18, 0.0 }
  0xbd   : > { %v397_v29 = vrot.slane %v396_v23, 4  ;;  %v404_v30 = vrot.slane %v403_v24, 4 }
  0xbf   : > { %v398_v32 = vadd.f32 %v397_v29, %v396_v23  ;;  %v405_v33 = vadd.f32 %v404_v30, %v403_v24 }
  0xc1   : > { %v399_v40 = vrot.slane %v398_v32, 2  ;;  %v406_v41 = vrot.slane %v405_v33, 2 }
  0xc3   : > { %v400_v44 = vadd.f32 %v399_v40, %v398_v32  ;;  %v407_v45 = vadd.f32 %v406_v41, %v405_v33 }
  0xc5   : > { %v401_v50 = vrot.slane %v400_v44, 1  ;;  %v408_v51 = vrot.slane %v407_v45, 1 }
  0xc7   : > { %v402_v53 = vadd.f32 %v401_v50, %v400_v44  ;;  %v409_v54 = vadd.f32 %v408_v51, %v407_v45 }
  0xc9   : > { %v410_v57 = vmul.f32 %v402_v53, %v382_v48  ;;  %v411_v58 = vmul.f32 %v409_v54, %v383_v49 }
  0xcb   : > { %v420_v60 = vmul.f32 %v418_v55, %v410_v57  ;;  %v421_v61 = vmul.f32 %v419_v56, %v411_v58 }
  0xcd   : > { %v425_v62 = vcombine.low %v420_v60, %v421_v61 }
  0xcf   : > { %v432_v63 = vrot.slane %v425_v62, %v431_v59 }
  0xd1   : > { %v439_v1 = vrot.slane %v432_v63, %v431_v59 }
  0xd3   : > { %v441_v3 = vadd.f32 %v439_v1, %v422_v0 }
  0xd5   : > { %446 = vst.msk [vmem:[#allocation2] sm:$0x3] %vm938_vm0, %v441_v3 }
  0xdc   : > { %v450_v4 = vld [vmem:[#allocation2] sm:$0x3] }
  0xdd   : > { %v455_v5 = vrot.slane %v450_v4, %v335_v27  ;;  %v459_v6 = vrot.slane %v450_v4, %v339_v28 }
  0xdf   : > { %v463_v7 = vsel %vm462_vm4, %v455_v5, 0.0  ;;  %v464_v8 = vsel %vm462_vm4, %v459_v6, 0.0 }
  0xe0   : > { %v465_v9 = vadd.f32 %v464_v8, %v463_v7 }
  0xe2   : > { %466 = vadd.xlane.f32.xlu0 %v465_v9 }
 0x16f   : > { %v467_v10 = vpop.xlane.xlu0 %466 }
 0x170   : > { %v468_v11 = vrot.slane %v467_v10, 4 }
 0x172   : > { %v469_v12 = vadd.f32 %v468_v11, %v467_v10 }
 0x174   : > { %v470_v2 = vrot.slane %v469_v12, 2 }
 0x176   : > { %v471_v13 = vadd.f32 %v470_v2, %v469_v12 }
 0x178   : > { %v472_v14 = vrot.slane %v471_v13, 1 }
 0x17a   : > { %v473_v15 = vadd.f32 %v472_v14, %v471_v13 }
 0x17c   : > { %601 = vpush %v473_v15 }
 0x1ad   : > { %s602_s29 = spop %601 }
 0x1ae   : > { %v475_v25 = vstv %s602_s29 }
 0x1af   : > { %476 = vst [vmem:[%s258_s22] sm:$0x1] %v475_v25 }
 0x1b0   : > { %723 = shalt.err (!%p720_p4)
}
 0x1b1   : > { %s724_s5 = scalar_lea.hbm %s998_s7, 16  ;;  %s728_s10 = scalar_lea.hbm %s1048_s3, 32 }
 0x1b2   : > { %p725_p10 = scmp.ne.s32.totalorder %s998_s7, %s724_s5  ;;  %p729_p2 = scmp.lt.u32.totalorder %s998_s7, %s1048_s3 }
 0x1b3   : > { %p730_p5 = scmp.lt.u32.totalorder %s728_s10, %s724_s5  ;;  %p732_p9 = scmp.lt.u32.totalorder %s724_s5, %s998_s7 }
 0x1b4   : > { %p726_p12 = pnand %p725_p10, %p1059_p11 }
 0x1b5   : > { %p731_p8 = por %p730_p5, %p729_p2 }
 0x1b6   : > { %p727_p1 = pneg %p726_p12 }
 0x1b7   : > { %p733_p0 = por %p732_p9, %p731_p8 }
 0x1b9   : > { %p734_p7 = pnand %p733_p0, %p727_p1 }
 0x1bb   : > { %737 = shalt.err (!%p734_p7)
}
 0x1bc   : > { %605 = dma.vmem_to_hbm [thread:$0]  (%p1059_p11), %s993_s23, 16, %s998_s7, %s478_s11  }
 0x1bd PF: > { %s503_s22 = sand.u32 1, %s772_s12   ;;  %p1060_p13 = scmp.ne.s32.totalorder %s1053_s27, 0 }
 0x1be   : > { %p1061_p3 = scmp.ge.s32.totalorder %s792_s17, 2  ;;  %s504_s28 = scalar_lea.sflag [#allocation5], %s503_s22 }
 0x1c0   : > { %p612_p6 = pnand %p1061_p3, %p1060_p13 }
 0x1c2   : > { %767 = dma.done.wait (!%p612_p6), %s504_s28, 16  }
 0x1c3   : > { %769 = vsyncadd (!%p612_p6), %s504_s28, 4294967280  ;;  %s19_s17 = sadd.s32 1, %s792_s17   ;;  %s1062_s12 = smov %s776_s13 }
 0x1c4   : > { %p16_p4 = scmp.ge.s32.totalorder %s19_s17, 4   ;;  %s1063_s13 = smov %s780_s14 }
 0x1c5   : > { %s1064_s14 = smov %s875_s26  ;;  %s1065_s15 = smov %s788_s16 }
 0x1c6   : > { %s1066_s16 = smov %s1068_s20  ;;  %18 = sbr.rel (!%p16_p4) target bundleno = 6 (0x6), region = 88 }
 0x1cd   :  { %508 = vsyncpa [#allocation4], 1 }
 0x1ce   :  { %510 = vsyncpa [#allocation4 + $0x1], 1 }
 0x1cf   :  { %511 = vsyncpa [#allocation5], 1 }
 0x1d0   :  { %513 = vsyncpa [#allocation5 + $0x1], 1 }

</bundles_post_ra>
